<compile_context>
chip_gen: v5e
topology: v5e:2x2
jax: 0.10.0
libtpu: 0.0.40
codegen_flags: <defaults>
</compile_context>

<pallas_src>
import functools
import math

import jax
import jax.numpy as jnp
from jax import lax
from jax.experimental import pallas as pl
from jax.experimental.pallas import tpu as pltpu


# --------------------------------------------------------------------------
# Helpers
# --------------------------------------------------------------------------

def _choose_tile(dim, target):
    """Largest multiple-of-8 tile <= target that divides `dim` (else full dim)."""
    for t in (512, 256, 128, 64, 32, 16, 8):
        if t <= target and t <= dim and dim % t == 0:
            return t
    return dim


def _vmem_capacity_bytes():
    """Physical VMEM per TensorCore; conservative 64 MiB (v7x) if unknown."""
    try:
        cap = getattr(pltpu.get_tpu_info(), "vmem_capacity_bytes", None)
        if cap:
            return int(cap)
    except Exception:
        pass
    return 64 * 1024 * 1024


@functools.lru_cache(maxsize=None)
def _single_buffering_supported():
    """Probe whether pipeline_mode=pl.Buffered(1) compiles/runs on this backend."""
    try:
        def probe_kernel(x_ref, w_ref, o_ref):
            o_ref[...] = x_ref[...] + w_ref[...]

        fn = pl.pallas_call(
            probe_kernel,
            out_shape=jax.ShapeDtypeStruct((16, 128), jnp.float32),
            grid_spec=pltpu.PrefetchScalarGridSpec(
                num_scalar_prefetch=0,
                grid=(2,),
                in_specs=[
                    pl.BlockSpec((8, 128), lambda i: (i, 0)),
                    pl.BlockSpec((8, 128), lambda i: (0, 0),
                                 pipeline_mode=pl.Buffered(1)),
                ],
                out_specs=pl.BlockSpec((8, 128), lambda i: (i, 0)),
            ),
        )
        jax.block_until_ready(
            fn(jnp.zeros((16, 128), jnp.float32), jnp.ones((8, 128), jnp.float32)))
        return True
    except Exception:
        return False


def _const_spec(block_shape, index_map):
    """BlockSpec for a grid-invariant block (weights/biases): single-buffered
    when supported so only one copy lives in VMEM (critical on v7x's 64 MiB)."""
    if _single_buffering_supported():
        return pl.BlockSpec(block_shape, index_map, pipeline_mode=pl.Buffered(1))
    return pl.BlockSpec(block_shape, index_map)


# --------------------------------------------------------------------------
# Pass 1: linear projection kernel (runs once per token per projection)
# --------------------------------------------------------------------------

def _linear_kernel(x_ref, w_ref, b_ref, o_ref, *, scale):
    y = jnp.dot(x_ref[...], w_ref[...], preferred_element_type=jnp.float32)
    y = y + b_ref[0]
    if scale != 1.0:
        y = y * scale
    o_ref[...] = y.astype(o_ref.dtype)


def _project(x2d, w_t, b, *, scale, tile_m, vmem_limit):
    """y = (x @ W^T + b) * scale on the MXU (bf16 operands, f32 accumulate)."""
    M, D = x2d.shape
    TM = _choose_tile(M, tile_m)
    cost = pl.CostEstimate(
        flops=2 * M * D * D,
        transcendentals=0,
        bytes_accessed=2 * M * D * 2 + D * D * 2 + D * 4,
    )
    return pl.pallas_call(
        functools.partial(_linear_kernel, scale=scale),
        out_shape=jax.ShapeDtypeStruct((M, D), jnp.bfloat16),
        grid_spec=pltpu.PrefetchScalarGridSpec(
            num_scalar_prefetch=0,
            grid=(M // TM,),
            in_specs=[
                pl.BlockSpec((TM, D), lambda i: (i, 0)),
                _const_spec((D, D), lambda i: (0, 0)),
                _const_spec((1, D), lambda i: (0, 0)),
            ],
            out_specs=pl.BlockSpec((TM, D), lambda i: (i, 0)),
        ),
        compiler_params=pltpu.CompilerParams(
            dimension_semantics=("parallel",),
            vmem_limit_bytes=vmem_limit,
        ),
        cost_estimate=cost,
    )(x2d, w_t, b)


# --------------------------------------------------------------------------
# Pass 2: flash attention + fused output projection
# --------------------------------------------------------------------------

def _flash_mha_kernel(q_ref, k_ref, v_ref, wo_ref, bo_ref, o_ref,
                      m_scr, l_scr, acc_scr, ctx_scr,
                      *, num_heads, head_dim):
    """One (batch, q-tile, kv-tile) grid step.

    Shapes seen by the kernel:
      q_ref        : (1, H, TQ, hd) bf16   (already scaled by head_dim**-0.5)
      k_ref, v_ref : (1, H, TK, hd) bf16
      wo_ref       : (D, D) bf16,  bo_ref: (1, D) f32
      o_ref        : (1, TQ, D)
      m_scr, l_scr : (H, TQ, 1)  f32   online-softmax running max / sum
      acc_scr      : (H, TQ, hd) f32   weighted-V accumulator
      ctx_scr      : (TQ, D)     bf16  normalized context, heads along lanes
    """
    ki = pl.program_id(2)
    nk = pl.num_programs(2)
    f32, bf16 = jnp.float32, jnp.bfloat16

    @pl.when(ki == 0)
    def _init():
        m_scr[...] = jnp.full_like(m_scr, -jnp.inf)
        l_scr[...] = jnp.zeros_like(l_scr)
        acc_scr[...] = jnp.zeros_like(acc_scr)

    q = q_ref[0]                       # (H, TQ, hd) bf16
    k = k_ref[0]                       # (H, TK, hd) bf16
    v = v_ref[0]                       # (H, TK, hd) bf16

    # Batched-over-heads QK^T (no explicit transpose: contract the hd dims).
    s = lax.dot_general(q, k, (((2,), (2,)), ((0,), (0,))),
                        preferred_element_type=f32)         # (H, TQ, TK) f32

    m_prev = m_scr[...]
    m_new = jnp.maximum(m_prev, jnp.max(s, axis=-1, keepdims=True))
    alpha = jnp.exp(m_prev - m_new)                          # (H, TQ, 1) f32
    p = jnp.exp(s - m_new)                                   # (H, TQ, TK) f32

    l_scr[...] = alpha * l_scr[...] + jnp.sum(p, axis=-1, keepdims=True)
    pv = lax.dot_general(p.astype(bf16), v, (((2,), (1,)), ((0,), (0,))),
                         preferred_element_type=f32)         # (H, TQ, hd) f32
    acc_scr[...] = alpha * acc_scr[...] + pv
    m_scr[...] = m_new

    # After the last kv tile: normalize, lay the heads out along lanes, then
    # ONE [TQ, D] x [D, D] output-projection matmul (D-wide MXU contraction).
    @pl.when(ki == nk - 1)
    def _finalize():
        for h in range(num_heads):     # lane-aligned when head_dim % 128 == 0
            ctx_scr[:, h * head_dim:(h + 1) * head_dim] = (
                acc_scr[h] / l_scr[h]).astype(bf16)
        out = jnp.dot(ctx_scr[...], wo_ref[...], preferred_element_type=f32)
        o_ref[0] = (out + bo_ref[0]).astype(o_ref.dtype)


def _flash_vmem_bytes(H, hd, D, TQ, TK, single_buffer_weights):
    bf16, f32 = 2, 4
    wbuf = 1 if single_buffer_weights else 2
    blocks = (2 * H * TQ * hd * bf16            # q block (double-buffered)
              + 2 * 2 * H * TK * hd * bf16      # k and v blocks
              + 2 * TQ * D * f32                # output block
              + wbuf * (D * D * bf16 + D * f32))
    scratch = (2 * H * TQ * 128 * f32           # m, l (lane-padded last dim)
               + H * TQ * hd * f32              # acc
               + TQ * D * bf16)                 # merged context
    return blocks + scratch


def _pick_attention_tiles(S, H, hd, D, vmem_limit, single_buffer_weights, target):
    t = target
    while True:
        TQ = _choose_tile(S, t)
        TK = _choose_tile(S, t)
        fits = (_flash_vmem_bytes(H, hd, D, TQ, TK, single_buffer_weights)
                <= int(0.75 * vmem_limit))
        if fits or t <= 64:
            return TQ, TK
        t //= 2


def multi_head_attention(q, k, v, params, num_heads, *,
                         q_tile=None, kv_tile=None, proj_tile=512):
    """Equivalent of MultiHeadAttention.forward(q, k, v, mask=None), eval mode."""
    B, S, D = q.shape
    assert D % num_heads == 0, "hidden_dim must be divisible by num_heads"
    hd = D // num_heads
    scale = hd ** (-0.5)
    out_dtype = q.dtype

    wq_t, bq, wk_t, bk, wv_t, bv, wo_t, bo = params

    # bf16 MXU operands (accumulation stays f32 in-kernel); biases stay f32.
    to_bf16 = lambda x: x.astype(jnp.bfloat16)
    wq_t, wk_t, wv_t, wo_t = map(to_bf16, (wq_t, wk_t, wv_t, wo_t))
    bq = bq.reshape(1, D).astype(jnp.float32)
    bk = bk.reshape(1, D).astype(jnp.float32)
    bv = bv.reshape(1, D).astype(jnp.float32)
    bo = bo.reshape(1, D).astype(jnp.float32)

    # Per-generation VMEM budget: 128-MiB chips (v5e/v6e) -> 512 tiles / 96 MiB
    # limit; 64-MiB chips (v7x) -> 256 tiles / 44 MiB, leaving headroom for
    # compiler-internal scratch and the double-buffered activation tiles.
    cap = _vmem_capacity_bytes()
    if cap >= 100 * (1 << 20):
        vmem_limit, tile_target = 96 * (1 << 20), 512
    else:
        vmem_limit, tile_target = 44 * (1 << 20), 256

    single_buf = _single_buffering_supported()

    # ---- Pass 1: project Q/K/V once per token (scale folded into Q). ----
    q_p = _project(to_bf16(q).reshape(B * S, D), wq_t, bq,
                   scale=scale, tile_m=proj_tile, vmem_limit=vmem_limit)
    k_p = _project(to_bf16(k).reshape(B * S, D), wk_t, bk,
                   scale=1.0, tile_m=proj_tile, vmem_limit=vmem_limit)
    v_p = _project(to_bf16(v).reshape(B * S, D), wv_t, bv,
                   scale=1.0, tile_m=proj_tile, vmem_limit=vmem_limit)

    # Head-split to (B, H, S, hd) so per-head access in the attention kernel is
    # a leading-axis index (lane-dense), not an unaligned lane slice.
    def split_heads(x):
        return x.reshape(B, S, num_heads, hd).transpose(0, 2, 1, 3)

    q_p, k_p, v_p = split_heads(q_p), split_heads(k_p), split_heads(v_p)

    # ---- Pass 2: flash attention with fused output projection. ----
    if q_tile is None and kv_tile is None:
        TQ, TK = _pick_attention_tiles(S, num_heads, hd, D, vmem_limit,
                                       single_buf, tile_target)
    else:
        TQ = _choose_tile(S, q_tile or tile_target)
        TK = _choose_tile(S, kv_tile or tile_target)

    grid = (B, S // TQ, S // TK)

    q_spec = pl.BlockSpec((1, num_heads, TQ, hd), lambda b, qi, ki: (b, 0, qi, 0))
    kv_spec = pl.BlockSpec((1, num_heads, TK, hd), lambda b, qi, ki: (b, 0, ki, 0))
    wo_spec = _const_spec((D, D), lambda b, qi, ki: (0, 0))
    bo_spec = _const_spec((1, D), lambda b, qi, ki: (0, 0))
    out_spec = pl.BlockSpec((1, TQ, D), lambda b, qi, ki: (b, qi, 0))

    kernel = functools.partial(_flash_mha_kernel, num_heads=num_heads, head_dim=hd)

    cost = pl.CostEstimate(
        flops=4 * B * S * S * D + 2 * B * S * D * D,
        transcendentals=B * num_heads * S * S,
        bytes_accessed=3 * B * S * D * 2 + B * S * D * 4 + D * D * 2 + D * 4,
    )

    return pl.pallas_call(
        kernel,
        out_shape=jax.ShapeDtypeStruct((B, S, D), out_dtype),
        grid_spec=pltpu.PrefetchScalarGridSpec(
            num_scalar_prefetch=0,
            grid=grid,
            in_specs=[q_spec, kv_spec, kv_spec, wo_spec, bo_spec],
            out_specs=out_spec,
            scratch_shapes=[
                pltpu.VMEM((num_heads, TQ, 1), jnp.float32),   # running max
                pltpu.VMEM((num_heads, TQ, 1), jnp.float32),   # running sum
                pltpu.VMEM((num_heads, TQ, hd), jnp.float32),  # V accumulator
                pltpu.VMEM((TQ, D), jnp.bfloat16),             # merged context
            ],
        ),
        compiler_params=pltpu.CompilerParams(
            # kv axis must stay innermost + "arbitrary": online-softmax state
            # in scratch is carried across it.
            dimension_semantics=("parallel", "parallel", "arbitrary"),
            vmem_limit_bytes=vmem_limit,
        ),
        cost_estimate=cost,
    )(q_p, k_p, v_p, wo_t, bo)


# --------------------------------------------------------------------------
# Reference + test
# --------------------------------------------------------------------------

def xavier_uniform(key, fan_out, fan_in, dtype=jnp.float32):
    limit = math.sqrt(6.0 / (fan_in + fan_out))
    return jax.random.uniform(key, (fan_out, fan_in), dtype, -limit, limit)


def reference_mha(q, k, v, params, num_heads, matmul_dtype=jnp.float32):
    """Pure-JAX reference; matmul_dtype=bf16 mirrors the kernel's MXU precision."""
    wq_t, bq, wk_t, bk, wv_t, bv, wo_t, bo = params
    B, S, D = q.shape
    hd = D // num_heads
    scale = hd ** (-0.5)
    md = matmul_dtype

    def proj(x, w, b):
        return jnp.dot(x.astype(md), w.astype(md),
                       preferred_element_type=jnp.float32) + b

    def split(x):
        return x.reshape(B, S, num_heads, hd).transpose(0, 2, 1, 3)

    Q = split(proj(q, wq_t, bq)) * scale
    K = split(proj(k, wk_t, bk))
    V = split(proj(v, wv_t, bv))
    scores = jnp.einsum('bhqd,bhkd->bhqk', Q.astype(md), K.astype(md),
                        preferred_element_type=jnp.float32)
    attn = jax.nn.softmax(scores, axis=-1)
    ctx = jnp.einsum('bhqk,bhkd->bhqd', attn.astype(md), V.astype(md),
                     preferred_element_type=jnp.float32)
    ctx = ctx.transpose(0, 2, 1, 3).reshape(B, S, D)
    return jnp.dot(ctx.astype(md), wo_t.astype(md),
                   preferred_element_type=jnp.float32) + bo


if __name__ == "__main__":
    B, S, D, H = 2, 8, 32, 4

    key = jax.random.PRNGKey(0)
    keys = jax.random.split(key, 8)

    q = jax.random.normal(keys[0], (B, S, D), jnp.float32)
    k = jax.random.normal(keys[1], (B, S, D), jnp.float32)
    v = jax.random.normal(keys[2], (B, S, D), jnp.float32)

    # Deterministic parameter init: xavier-uniform weights, zero biases.
    wq = xavier_uniform(keys[3], D, D)
    wk = xavier_uniform(keys[4], D, D)
    wv = xavier_uniform(keys[5], D, D)
    wo = xavier_uniform(keys[6], D, D)
    zeros = jnp.zeros((D,), jnp.float32)
    # Weights pre-transposed to [in, out] so kernels compute x @ W.T + b (nn.Linear).
    params = (wq.T, zeros, wk.T, zeros, wv.T, zeros, wo.T, zeros)

    out = multi_head_attention(q, k, v, params, num_heads=H)
    out = jax.block_until_ready(out)
    assert out.shape == (B, S, D)

    # Tight check vs. a reference that mirrors the kernel's bf16 MXU operands.
    ref_bf16 = reference_mha(q, k, v, params, H, matmul_dtype=jnp.bfloat16)
    assert jnp.allclose(out, ref_bf16, atol=2e-2, rtol=2e-2), "mismatch vs bf16 reference"
    # Sanity check vs. the full-f32 reference (bounds the bf16 rounding error).
    ref_f32 = reference_mha(q, k, v, params, H, matmul_dtype=jnp.float32)
    assert jnp.allclose(out, ref_f32, atol=1e-1, rtol=1e-1), "mismatch vs f32 reference"

    print("KERNEL_OK")
</pallas_src>

<mosaic_0001>
module attributes {stable_mosaic.version = 11 : i64} {
  func.func @probe_kernel(%arg0: i32, %arg1: memref<8x128xf32, #tpu.memory_space<vmem>>, %arg2: memref<8x128xf32, #tpu.memory_space<vmem>>, %arg3: memref<8x128xf32, #tpu.memory_space<vmem>>) attributes {dimension_semantics = [#tpu.dimension_semantics<arbitrary>], iteration_bounds = array<i64: 2>, scalar_prefetch = 0 : i64, scratch_operands = 0 : i64, tpu.core_type = #tpu.core_type<tc>, window_params = [{transform_indices = @transform_0, window_bounds = array<i64: 8, 128>}, {pipeline_mode = #tpu.pipeline_mode<synchronous>, transform_indices = @transform_1, window_bounds = array<i64: 8, 128>}, {transform_indices = @transform_2, window_bounds = array<i64: 8, 128>}]} {
    %c0 = arith.constant 0 : index
    %c0_0 = arith.constant 0 : index
    %0 = vector.load %arg1[%c0, %c0_0] : memref<8x128xf32, #tpu.memory_space<vmem>>, vector<8x128xf32>
    %c0_1 = arith.constant 0 : index
    %c0_2 = arith.constant 0 : index
    %1 = vector.load %arg2[%c0_1, %c0_2] : memref<8x128xf32, #tpu.memory_space<vmem>>, vector<8x128xf32>
    %2 = arith.addf %0, %1 : vector<8x128xf32>
    %c0_3 = arith.constant 0 : index
    %c0_4 = arith.constant 0 : index
    %3 = vector.load %arg3[%c0_3, %c0_4] : memref<8x128xf32, #tpu.memory_space<vmem>>, vector<8x128xf32>
    tpu.vector_store %arg3[%c0_3, %c0_4], %2 {strides = array<i32>} : memref<8x128xf32, #tpu.memory_space<vmem>>, vector<8x128xf32>,
    return
  }
  func.func @transform_0(%arg0: i32) -> (i32, i32) {
    %c0_i32 = arith.constant 0 : i32
    %c0_i32_0 = arith.constant 0 : i32
    return %arg0, %c0_i32 : i32, i32
  }
  func.func @transform_1(%arg0: i32) -> (i32, i32) {
    %c0_i32 = arith.constant 0 : i32
    %c0_i32_0 = arith.constant 0 : i32
    %c0_i32_1 = arith.constant 0 : i32
    return %c0_i32, %c0_i32_0 : i32, i32
  }
  func.func @transform_2(%arg0: i32) -> (i32, i32) {
    %c0_i32 = arith.constant 0 : i32
    %c0_i32_0 = arith.constant 0 : i32
    return %arg0, %c0_i32 : i32, i32
  }
}

module attributes {stable_mosaic.version = 11 : i64} {
  func.func @_linear_kernel(%arg0: i32, %arg1: memref<16x32xbf16, #tpu.memory_space<vmem>>, %arg2: memref<32x32xbf16, #tpu.memory_space<vmem>>, %arg3: memref<1x32xf32, #tpu.memory_space<vmem>>, %arg4: memref<16x32xbf16, #tpu.memory_space<vmem>>) attributes {dimension_semantics = [#tpu.dimension_semantics<parallel>], iteration_bounds = array<i64: 1>, scalar_prefetch = 0 : i64, scratch_operands = 0 : i64, tpu.core_type = #tpu.core_type<tc>, window_params = [{transform_indices = @transform_0, window_bounds = array<i64: 16, 32>}, {pipeline_mode = #tpu.pipeline_mode<synchronous>, transform_indices = @transform_1, window_bounds = array<i64: 32, 32>}, {pipeline_mode = #tpu.pipeline_mode<synchronous>, transform_indices = @transform_2, window_bounds = array<i64: 1, 32>}, {transform_indices = @transform_3, window_bounds = array<i64: 16, 32>}]} {
    %c0 = arith.constant 0 : index
    %c0_0 = arith.constant 0 : index
    %0 = vector.load %arg1[%c0, %c0_0] : memref<16x32xbf16, #tpu.memory_space<vmem>>, vector<16x32xbf16>
    %c0_1 = arith.constant 0 : index
    %c0_2 = arith.constant 0 : index
    %1 = vector.load %arg2[%c0_1, %c0_2] : memref<32x32xbf16, #tpu.memory_space<vmem>>, vector<32x32xbf16>
    %cst = arith.constant dense<0.000000e+00> : vector<16x32xf32>
    %2 = tpu.matmul %0, %1, %cst {dimension_numbers = #tpu.dot_dimension_numbers<[1], [0], [0], [1], [0, 0, 1, 1], [], []>} : vector<16x32xbf16>, vector<32x32xbf16>, vector<16x32xf32> -> vector<16x32xf32>
    %c0_3 = arith.constant 0 : index
    %c0_4 = arith.constant 0 : index
    %3 = vector.load %arg3[%c0_3, %c0_4] : memref<1x32xf32, #tpu.memory_space<vmem>>, vector<1x32xf32>
    %4 = vector.shape_cast %3 : vector<1x32xf32> to vector<32xf32>
    %5 = vector.shape_cast %4 : vector<32xf32> to vector<1x32xf32>
    %6 = vector.broadcast %5 : vector<1x32xf32> to vector<16x32xf32>
    %7 = arith.addf %2, %6 : vector<16x32xf32>
    %cst_5 = arith.constant 0.353553385 : f32
    %8 = vector.broadcast %cst_5 : f32 to vector<16x32xf32>
    %9 = arith.mulf %7, %8 : vector<16x32xf32>
    %10 = arith.truncf %9 : vector<16x32xf32> to vector<16x32xbf16>
    %c0_6 = arith.constant 0 : index
    %c0_7 = arith.constant 0 : index
    %11 = vector.load %arg4[%c0_6, %c0_7] : memref<16x32xbf16, #tpu.memory_space<vmem>>, vector<16x32xbf16>
    tpu.vector_store %arg4[%c0_6, %c0_7], %10 {strides = array<i32>} : memref<16x32xbf16, #tpu.memory_space<vmem>>, vector<16x32xbf16>,
    return
  }
  func.func @transform_0(%arg0: i32) -> (i32, i32) {
    %c0_i32 = arith.constant 0 : i32
    %c0_i32_0 = arith.constant 0 : i32
    return %arg0, %c0_i32 : i32, i32
  }
  func.func @transform_1(%arg0: i32) -> (i32, i32) {
    %c0_i32 = arith.constant 0 : i32
    %c0_i32_0 = arith.constant 0 : i32
    %c0_i32_1 = arith.constant 0 : i32
    return %c0_i32, %c0_i32_0 : i32, i32
  }
  func.func @transform_2(%arg0: i32) -> (i32, i32) {
    %c0_i32 = arith.constant 0 : i32
    %c0_i32_0 = arith.constant 0 : i32
    %c0_i32_1 = arith.constant 0 : i32
    return %c0_i32, %c0_i32_0 : i32, i32
  }
  func.func @transform_3(%arg0: i32) -> (i32, i32) {
    %c0_i32 = arith.constant 0 : i32
    %c0_i32_0 = arith.constant 0 : i32
    return %arg0, %c0_i32 : i32, i32
  }
}

</mosaic_0001>

<bundles_post_ra>
// kernel: tpu_custom_call.1
= control target key start
LH: loop header
LB: loop body
LE: loop exit
PB: predicated region body
PF: predicated region fallthrough
CT: control target
= control target key end

     0   :  { %7 = vsyncpa [#allocation3], 0  ;;  %s633_s0 = inlined_call_operand.hbm [shape: f32[16,128], index: 0, kind: input, shape index: {}]   ;;  %s634_s1 = inlined_call_operand.hbm [shape: f32[8,128], index: 1, kind: input, shape index: {}]   ;;  %s635_s2 = inlined_call_operand.hbm [shape: f32[16,128], index: 2, kind: output, shape index: {}]  }
   0x1   :  { %9 = vsyncpa [#allocation3 + $0x1], 0 }
   0x2   :  { %10 = vsyncpa [#allocation6], 0 }
   0x3   :  { %11 = vsyncpa [#allocation4], 0 }
   0x4   :  { %13 = vsyncpa [#allocation4 + $0x1], 0  ;;  %s495_s9 = smov 0   ;;  %s497_s10 = smov 0  }
   0x5   :  { %s499_s11 = smov 0   ;;  %s501_s12 = smov 0  }
   0x6 LB: > { %s516_s13 = sadd.s32 4294967295, %s477_s12   ;;  %s276_s14 = sadd.s32 4294967294, %s477_s12   ;;  %s477_s12 = sphi %s501_s12, %s645_s12   ;;  %s473_s11 = sphi %s499_s11, %s644_s11   ;;  %s469_s10 = sphi %s497_s10, %s643_s10   ;;  %s465_s9 = sphi %s495_s9, %s642_s9  }
   0x7   : > { %p39_p0 = scmp.ne.s32.totalorder %s469_s10, %s465_s9  ;;  %p40_p1 = scmp.eq.s32.totalorder %s516_s13, 0 }
   0x8   : > { %p84_p2 = scmp.eq.s32.totalorder %s516_s13, 1  ;;  %p90_p3 = scmp.eq.s32.totalorder %s276_s14, 1 }
   0x9   : > { %p525_p4 = por %p40_p1, %p39_p0  ;;  %p277_p5 = scmp.ge.s32.totalorder %s477_s12, 1 }
   0xa   : > { %p530_p6 = por %p90_p3, %p39_p0  ;;  %p97_p7 = scmp.lt.s32.totalorder %s477_s12, 3 }
   0xb   : > { %s109_s19 = sshll.u32 %s634_s1, 4  ;;  %s479_s21 = smov [#allocation5]   ;;  %s110_s19 = int_to_ptr.hbm [resolvable:$true] %s109_s19 }
   0xc   : > { %p538_p8 = pnand %p277_p5, %p97_p7  ;;  %s111_s22 = sshll.u32 %s479_s21, 4  ;;  %s112_s22 = int_to_ptr.vmem [resolvable:$true] %s111_s22 }
   0xd   : > { %s548_s23 = sadd.s32 1, %s477_s12   ;;  %s26_s24 = sadd.s32 1, %s473_s11 }
   0xe   : > { %p298_p10 = pneg %p538_p8  ;;  %s23_s25 = ssub.s32 %s477_s12, %s548_s23 }
   0xf   : > { %p24_p12 = scmp.eq.s32.totalorder %s23_s25, 0  ;;  %p33_p13 = scmp.ne.s32.totalorder %s473_s11, %s469_s10 }
  0x10   : > { %p299_p11 = pnand %p298_p10, %p40_p1  ;;  %p34_p0 = scmp.eq.s32.totalorder %s477_s12, 0 }
  0x11   : > { %s557_s26 = scalar_select %p24_p12, %s473_s11, %s26_s24  }
  0x12   : > { %301 = dma.hbm_to_vmem [thread:$0]  (!%p299_p11), %s110_s19, 128, %s112_s22, [#allocation6]  }
  0x13   : > { %p561_p3 = por %p84_p2, %p33_p13  ;;  %p311_p5 = scmp.lt.s32.totalorder %s477_s12, 2 }
  0x14   : > { %s122_s28 = sand.u32 1, %s473_s11   ;;  %s281_s29 = sshll.u32 %s477_s12, 3 }
  0x15   : > { %p35_p7 = por %p34_p0, %p33_p13  ;;  %s280_s30 = sshll.u32 %s122_s28, 3 }
  0x16   : > { %s130_s5 = scalar_lea.hbm %s633_s0, %s281_s29  ;;  %s126_s7 = scalar_lea.vmem [#allocation2], %s280_s30 }
  0x17   : > { %s132_s6 = sshll.u32 %s130_s5, 4  ;;  %s134_s8 = sshll.u32 %s126_s7, 4  ;;  %s133_s6 = int_to_ptr.hbm [resolvable:$true] %s132_s6  ;;  %s135_s8 = int_to_ptr.vmem [resolvable:$true] %s134_s8 }
  0x18   : > { %p571_p10 = pnand %p311_p5, %p35_p7  ;;  %s123_s17 = scalar_lea.sflag [#allocation3], %s122_s28 }
  0x19   : > { %s377_s18 = sshra.s32 %s133_s6, 4  ;;  %s384_s24 = scalar_lea.hbm %s633_s0, 16  ;;  %s378_s18 = int_to_ptr.hbm [resolvable:$true] %s377_s18 }
  0x1a   : > { %s379_s19 = scalar_lea.hbm %s378_s18, 8  ;;  %p381_p11 = pneg %p571_p10 }
  0x1b   : > { %p380_p2 = scmp.ne.s32.totalorder %s378_s18, %s379_s19  ;;  %p385_p0 = scmp.lt.s32.totalorder %s378_s18, %s633_s0 }
  0x1c   : > { %p386_p5 = scmp.lt.s32.totalorder %s384_s24, %s379_s19 }
  0x1d   : > { %p382_p12 = pnand %p381_p11, %p380_p2 }
  0x1e   : > { %p387_p7 = por %p386_p5, %p385_p0 }
  0x1f   : > { %p383_p13 = pneg %p382_p12 }
  0x21   : > { %p388_p9 = pnand %p387_p7, %p383_p13 }
  0x23   : > { %391 = shalt.err (!%p388_p9)
}
  0x24   : > { %305 = dma.hbm_to_vmem [thread:$0]  (!%p571_p10), %s133_s6, 128, %s135_s8, %s123_s17  }
  0x25   : > { %143 = sbr.rel (%p538_p8) target bundleno = 60 (0x3c), region = 28  ;;  %s588_s28 = sand.u32 (!%p538_p8), 1, %s469_s10  }
  0x26   : > { %s283_s30 = sshll.u32 (!%p538_p8), %s588_s28, 3  ;;  %s146_s3 = scalar_lea.sflag (!%p538_p8), [#allocation3], %s588_s28 }
  0x27   : > { %s149_s4 = scalar_lea.vmem (!%p538_p8), [#allocation2], %s283_s30 }
  0x2a   : > { %452 = dma.done.wait (%p525_p4), %s146_s3, 128  }
  0x2b   : > { %454 = vsyncadd (%p525_p4), %s146_s3, 4294967168 }
  0x2c   : > { %456 = dma.done.wait (%p40_p1), [#allocation6], 128  }
  0x2d   : > { %458 = vsyncadd (%p40_p1), [#allocation6], 4294967168  ;;  %s287_s20 = sshll.u32 %s516_s13, 3  ;;  %s175_s8 = scalar_lea.vmem [#allocation7], %s283_s30  ;;  %v176_v0 = vld [vmem:[%s149_s4] sm:$0xff]  ;;  %v177_v1 = vld [vmem:[#allocation5] sm:$0xff] }
  0x2e   : > { %s191_s7 = scalar_lea.hbm %s635_s2, %s287_s20  ;;  %s193_s14 = sshll.u32 %s175_s8, 4  ;;  %v178_v2 = vadd.f32 %v177_v1, %v176_v0  ;;  %s194_s14 = int_to_ptr.vmem [resolvable:$true] %s193_s14 }
  0x2f   : > { %s195_s17 = sshll.u32 %s191_s7, 4  ;;  %s181_s15 = scalar_lea.sflag [#allocation4], %s588_s28  ;;  %s196_s17 = int_to_ptr.hbm [resolvable:$true] %s195_s17 }
  0x30   : > { %179 = vst [vmem:[%s175_s8] sm:$0xff] %v178_v2  ;;  %s421_s18 = sshra.s32 %s196_s17, 4  ;;  %s427_s22 = scalar_lea.hbm %s635_s2, 16  ;;  %s422_s18 = int_to_ptr.hbm [resolvable:$true] %s421_s18 }
  0x31   : > { %s423_s19 = scalar_lea.hbm %s422_s18, 8  ;;  %p428_p9 = scmp.lt.s32.totalorder %s422_s18, %s635_s2 }
  0x32   : > { %p424_p1 = scmp.ne.s32.totalorder %s422_s18, %s423_s19  ;;  %p429_p10 = scmp.lt.s32.totalorder %s427_s22, %s423_s19 }
  0x34   : > { %p425_p4 = pnand %p424_p1, %p561_p3  ;;  %p430_p2 = por %p429_p10, %p428_p9 }
  0x36   : > { %p426_p8 = pneg %p425_p4 }
  0x38   : > { %p431_p11 = pnand %p430_p2, %p426_p8 }
  0x3a   : > { %434 = shalt.err (!%p431_p11)
}
  0x3b   : > { %296 = dma.vmem_to_hbm [thread:$0]  (%p561_p3), %s194_s14, 128, %s196_s17, %s181_s15  }
  0x3c PF: > { %s207_s29 = sand.u32 1, %s465_s9   ;;  %p641_p12 = scmp.ge.s32.totalorder %s477_s12, 2 }
  0x3d   : > { %s208_s28 = scalar_lea.sflag [#allocation4], %s207_s29 }
  0x3e   : > { %p307_p13 = pnand %p641_p12, %p530_p6 }
  0x40   : > { %p308_p0 = pneg %p307_p13 }
  0x42   : > { %460 = dma.done.wait (%p308_p0), %s208_s28, 128  }
  0x43   : > { %462 = vsyncadd (%p308_p0), %s208_s28, 4294967168  ;;  %p16_p5 = scmp.ge.s32.totalorder %s548_s23, 4   ;;  %s642_s9 = smov %s469_s10 }
  0x44   : > { %s643_s10 = smov %s473_s11  ;;  %s644_s11 = smov %s557_s26 }
  0x45   : > { %s645_s12 = smov %s548_s23  ;;  %18 = sbr.rel (!%p16_p5) target bundleno = 6 (0x6), region = 77 }
  0x4a   :  { %214 = vsyncpa [#allocation3], 1 }
  0x4b   :  { %216 = vsyncpa [#allocation3 + $0x1], 1 }
  0x4c   :  { %217 = vsyncpa [#allocation6], 1 }
  0x4d   :  { %218 = vsyncpa [#allocation4], 1 }
  0x4e   :  { %220 = vsyncpa [#allocation4 + $0x1], 1 }

// kernel: tpu_custom_call.1
= control target key start
LH: loop header
LB: loop body
LE: loop exit
PB: predicated region body
PF: predicated region fallthrough
CT: control target
= control target key end

     0   :  { %8 = vsyncpa [#allocation3], 0  ;;  %s266_s0 = inlined_call_operand.hbm [shape: bf16[16,32], index: 0, kind: input, shape index: {}]   ;;  %s267_s1 = inlined_call_operand.hbm [shape: bf16[32,32], index: 1, kind: input, shape index: {}]   ;;  %s268_s2 = inlined_call_operand.vmem [shape: f32[1,32], index: 2, kind: input, shape index: {}]   ;;  %s269_s3 = inlined_call_operand.hbm [shape: bf16[16,32], index: 3, kind: output, shape index: {}]  }
   0x1   :  { %9 = vsyncpa [#allocation6], 0 }
   0x2   :  { %10 = vsyncpa [#allocation4], 0  ;;  %s15_s14 = sshll.u32 %s266_s0, 4  ;;  %s220_s15 = smov [#allocation2]   ;;  %s16_s14 = int_to_ptr.hbm [resolvable:$true] %s15_s14 }
   0x3   :  { %s17_s16 = sshll.u32 %s220_s15, 4  ;;  %s28_s19 = sshll.u32 %s267_s1, 4  ;;  %s18_s16 = int_to_ptr.vmem [resolvable:$true] %s17_s16  ;;  %s29_s19 = int_to_ptr.hbm [resolvable:$true] %s28_s19 }
   0x4   :  { %s221_s20 = smov 64   ;;  %s222_s21 = smov 4  }
   0x5   :  { %23 = dma.hbm_to_vmem [thread:$0]  %s16_s14, 128, %s18_s16, [#allocation3], %s221_s20, %s221_s20, %s222_s21  }
   0x6   :  { %s223_s22 = smov [#allocation5]  }
   0x7   :  { %s30_s23 = sshll.u32 %s223_s22, 4  ;;  %s31_s23 = int_to_ptr.vmem [resolvable:$true] %s30_s23 }
   0x8   :  { %36 = dma.hbm_to_vmem [thread:$0]  %s29_s19, 256, %s31_s23, [#allocation6], %s221_s20, %s221_s20, %s222_s21  }
   0x9   :  { %214 = dma.done.wait [#allocation3], 128  }
   0xa   :  { %215 = vsyncadd [#allocation3], 4294967168 }
   0xb   :  { %216 = dma.done.wait [#allocation6], 256  }
   0xc   :  { %217 = vsyncadd [#allocation6], 4294967040  ;;  %v135_v0 = vld [vmem:[#allocation5 + $0x8] sm:$0xff]  ;;  %v134_v1 = vld [vmem:[#allocation5] sm:$0xff]  ;;  %vm75_vm0 = vcmask 261120   ;;  %vm97_vm1 = vcmask 257024  }
   0xd   :  { %85 = vmatpush.bf16.msra.mxu0 %v135_v0  ;;  %v133_v2 = vld [vmem:[#allocation2] sm:$0xff]  ;;  %s224_s24 = smov [#allocation7]   ;;  %s106_s28 = sshll.u32 %s269_s3, 4  ;;  %s107_s28 = int_to_ptr.hbm [resolvable:$true] %s106_s28 }
   0xe   :  { %v141_v3 = vld [vmem:[%s268_s2] ss:$0 sm:$0xff]  ;;  %s104_s25 = sshll.u32 %s224_s24, 4  ;;  %s105_s25 = int_to_ptr.vmem [resolvable:$true] %s104_s25 }
  0x11   :  { %86 = vmatpush.bf16.msra.mxu0 %v134_v1 }
  0x14   :  { %132 = vmatmul.msk.bf16.vlgmr.msra.gmra.mxu0 %vm75_vm0, %v133_v2 }
  0x91   :  { %v88_v4 = vpop.f32.mrf.mxu0 }
  0x92   :  { %v89_v5 = vadd.f32 %v141_v3, %v88_v4 }
  0x94   :  { %v93_v6 = vmul.f32 0.35355338, %v89_v5 }
  0x96   :  { %v95_v7 = vpack.c.bf16 %v93_v6, %v93_v6 }
  0x98   :  { %98 = vst.msk [vmem:[#allocation7] sm:$0xf] %vm97_vm1, %v95_v7 }
  0x99   :  { %v90_v8 = vpop.f32.mrf.mxu0 }
  0x9a   :  { %v91_v9 = vadd.f32 %v141_v3, %v90_v8 }
  0x9c   :  { %v94_v10 = vmul.f32 0.35355338, %v91_v9 }
  0x9e   :  { %v96_v11 = vpack.c.bf16 %v94_v10, %v94_v10 }
  0xa0   :  { %99 = vst.msk [vmem:[#allocation7 + $0x4] sm:$0xf] %vm97_vm1, %v96_v11 }
  0xa1   :  { %112 = dma.vmem_to_hbm [thread:$0]  %s105_s25, 128, %s107_s28, [#allocation4], %s221_s20, %s221_s20, %s222_s21  }
  0xa2   :  { %218 = dma.done.wait [#allocation4], 128  }
  0xa3   :  { %219 = vsyncadd [#allocation4], 4294967168 }
  0xa4   :  { %117 = vsyncpa [#allocation3], 1 }
  0xa5   :  { %118 = vsyncpa [#allocation6], 1 }
  0xa6   :  { %119 = vsyncpa [#allocation4], 1 }

</bundles_post_ra>
